<compile_context>
chip_gen: v5e
topology: v5e:2x2
jax: 0.10.0
libtpu: 0.0.40
codegen_flags: <defaults>
</compile_context>

<pallas_src>
import jax
import jax.numpy as jnp
from jax.experimental import pallas as pl
from jax.experimental.pallas import tpu as pltpu


def _round_up(x, m):
    return ((x + m - 1) // m) * m


def _make_kernel(has_soft):
    """Grid = (batch blocks [parallel], memory-bank tiles [arbitrary reduction])."""

    def _body(f_ref, w_ref, lab_ref, scale_ref, mask_ref, tgt_ref,
              soft_ref, l1_ref, l2_ref, xn_ref, acc_ref):
        m_idx = pl.program_id(1)

        # --- per batch block init: normalize the resident feature block once,
        #     cache it in the bank dtype, zero the per-cluster accumulator. ---
        @pl.when(m_idx == 0)
        def _init():
            x = f_ref[...].astype(jnp.float32)                   # (TB, Fd)
            nrm = jnp.sqrt(jnp.sum(x * x, axis=1, keepdims=True))
            xn_ref[...] = (x / jnp.maximum(nrm, 1e-12)).astype(xn_ref.dtype)
            acc_ref[...] = jnp.zeros_like(acc_ref)

        # --- accumulate: csum[b, c] += sum_{rows r in tile, label[r]==c} <xn_b, mem_r> ---
        w = w_ref[...]                                           # (TM, Fd), bank dtype (bf16)
        sim_m = jax.lax.dot_general(                             # (TB, TM), f32 accumulation
            xn_ref[...], w, (((1,), (1,)), ((), ())),
            preferred_element_type=jnp.float32)
        lab = lab_ref[...]                                       # (TM, 1) int32
        one_hot = (lab == jax.lax.broadcasted_iota(
            jnp.int32, (lab.shape[0], acc_ref.shape[1]), 1)).astype(w.dtype)
        # bf16 x bf16 -> f32 on the MXU (this is the deliberate precision choice;
        # default TPU matmul precision would demote f32 operands to bf16 anyway).
        acc_ref[...] += jnp.dot(sim_m.astype(w.dtype), one_hot,
                                preferred_element_type=jnp.float32)

        # --- finalize on the last memory tile: masked softmax + log + losses ---
        @pl.when(m_idx == pl.num_programs(1) - 1)
        def _finalize():
            cmask = mask_ref[...]                                # (1, C_pad) cluster validity
            # scale = 1/(cluster_size * temp) (1 for empty clusters), so `logits`
            # equals the reference's per-cluster mean of (similarity / temp).
            logits = acc_ref[...] * scale_ref[...]               # (TB, C_pad)
            # NOTE: no row-max subtraction, matching the PyTorch reference; safe
            # because inputs & bank are L2-normalized so |logits| <= 1/temp.
            exps = jnp.exp(logits) * cmask
            ssum = jnp.sum(exps, axis=1, keepdims=True) + 1e-6
            inv = pl.reciprocal(ssum, approx=True)               # EUP path, off the VALU
            logp = jnp.log(exps * inv + 1e-6)
            # NLL: select the target column via an in-kernel one-hot (padded batch
            # rows carry target = -1 and contribute nothing).
            tgt_oh = (tgt_ref[...] == jax.lax.broadcasted_iota(
                jnp.int32, (tgt_ref.shape[0], acc_ref.shape[1]), 1)).astype(jnp.float32)
            l1_ref[...] = jnp.broadcast_to(-jnp.sum(tgt_oh * logp), l1_ref.shape)
            if has_soft:
                l2 = -jnp.sum(soft_ref[...].astype(jnp.float32) * logp)
                l2_ref[...] = jnp.broadcast_to(l2, l2_ref.shape)

    if has_soft:
        def kernel(f, w, lab, sc, mk, tg, so, l1, l2, xn, acc):
            _body(f, w, lab, sc, mk, tg, so, l1, l2, xn, acc)
    else:
        def kernel(f, w, lab, sc, mk, tg, l1, xn, acc):
            _body(f, w, lab, sc, mk, tg, None, l1, None, xn, acc)
    return kernel


def _default_vmem_limit():
    # 128 MiB-VMEM parts (v5e/v6e): fat tiles; 64 MiB parts (v7x): stay lean.
    try:
        cap = pltpu.get_tpu_info().vmem_capacity_bytes
    except Exception:
        cap = 64 * 1024 * 1024
    return 96 * 1024 * 1024 if cap >= 120 * 1024 * 1024 else 48 * 1024 * 1024


def _vmem_estimate(TB, TM, Fd, C_pad, bank_bytes, has_soft):
    est = 2 * TM * Fd * bank_bytes          # bank tile (double-buffered)
    est += 2 * TM * 128 * 4                 # (TM, 1) int32 label column (lane-padded)
    est += TM * C_pad * bank_bytes          # in-kernel one-hot temporary
    est += TB * TM * 4                      # f32 similarity tile temporary
    est += 2 * TB * Fd * 4                  # f32 feat block (double-buffered)
    est += TB * Fd * bank_bytes             # normalized-feature scratch (bank dtype)
    est += TB * C_pad * 4                   # per-cluster f32 accumulator
    est += 2 * TB * 128 * 4                 # target column block
    if has_soft:
        est += 2 * TB * C_pad * 2           # bf16 soft labels (double-buffered)
    est += 4 * C_pad * 4 + 8192             # scale/mask blocks + loss outputs slack
    return est


def hybrid_memory_forward(feat, indexes, memory_features, memory_labels,
                          num_classes, cur_epoch,
                          sample_softlabels=None, batch_indexs_labels=None,
                          feature_weights=None,
                          temp=0.05, alpha_weight=1.0,
                          tile_m=None, tile_b=None, vmem_limit_bytes=None):
    # TODO(synk): HM's momentum EMA update of the memory bank happens only in
    # autograd backward; forward semantics (matmul against the bank) are covered.
    # feature_weights[indexes] is gathered by the reference but unused by any
    # non-zero-weight loss term, so it is omitted here.
    del feature_weights
    B, Fd = feat.shape
    M = memory_features.shape[0]
    C = int(num_classes)          # static: avoids labels.max() host sync / recompiles
    has_soft = (cur_epoch != 0)

    compute_dtype = memory_features.dtype   # bf16 bank -> bf16 MXU inputs, f32 accumulate
    bank_bytes = jnp.dtype(compute_dtype).itemsize

    # Static, lane/sublane-friendly padding & tiling.
    C_pad = _round_up(max(C, 128), 128)     # lane-dense softmax / loss tail

    if vmem_limit_bytes is None:
        vmem_limit_bytes = _default_vmem_limit()
    budget = int(0.70 * vmem_limit_bytes)   # headroom for compiler scratch / spills

    # Batch tiling: cover the whole batch in one block by default (nb == 1) so the
    # bank streams from HBM exactly once; only split when asked / forced by VMEM.
    if tile_b is None:
        TB = _round_up(B, 16)
    else:
        TB = min(_round_up(int(tile_b), 16), _round_up(B, 16))

    # Memory-bank tiling: multiples of 256 keep both matmuls MXU-shaped and the
    # sim tile lane-dense; pick the largest TM that fits the VMEM budget.
    tm_cap = _round_up(M, 256)
    TM = min(_round_up(int(tile_m), 256), tm_cap) if tile_m is not None else min(2048, tm_cap)
    while TM > 256 and _vmem_estimate(TB, TM, Fd, C_pad, bank_bytes, has_soft) > budget:
        TM -= 256
    # Last resort: shrink the batch block (costs extra bank reads).
    while TB > 16 and _vmem_estimate(TB, TM, Fd, C_pad, bank_bytes, has_soft) > budget:
        TB = _round_up(TB // 2, 16)

    B_pad = _round_up(B, TB)
    M_pad = _round_up(M, TM)
    nb, nm = B_pad // TB, M_pad // TM

    # ---- glue / padding (plain JAX) ----
    feat_p = jnp.zeros((B_pad, Fd), jnp.float32).at[:B].set(feat.astype(jnp.float32))
    mem_p = jnp.zeros((M_pad, Fd), compute_dtype).at[:M].set(
        memory_features.astype(compute_dtype))
    labels_i = memory_labels.astype(jnp.int32)
    # padded memory rows get label == C, which lands in a masked / out-of-range column
    lab_p = jnp.full((M_pad, 1), C, dtype=jnp.int32).at[:M, 0].set(labels_i)

    counts = jnp.zeros((C_pad,), jnp.float32).at[labels_i].add(1.0)
    denom = jnp.where(counts > 0, counts, 1.0)                  # mask*nums + (1-mask)
    col_scale = (1.0 / (denom * float(temp))).reshape(1, C_pad)
    cmask = (counts > 0).astype(jnp.float32).reshape(1, C_pad)

    targets = labels_i[indexes].astype(jnp.int32)               # (B,)
    tgt_p = jnp.full((B_pad, 1), -1, dtype=jnp.int32).at[:B, 0].set(targets)

    operands = [feat_p, mem_p, lab_p, col_scale, cmask, tgt_p]
    in_specs = [
        pl.BlockSpec((TB, Fd), lambda b, m: (b, 0)),            # feat (resident per b block)
        pl.BlockSpec((TM, Fd), lambda b, m: (m, 0)),            # memory bank tile (streamed)
        pl.BlockSpec((TM, 1), lambda b, m: (m, 0)),             # memory labels tile
        pl.BlockSpec((1, C_pad), lambda b, m: (0, 0)),          # 1/(count*temp)
        pl.BlockSpec((1, C_pad), lambda b, m: (0, 0)),          # cluster validity mask
        pl.BlockSpec((TB, 1), lambda b, m: (b, 0)),             # int32 targets column
    ]
    if has_soft:
        soft = sample_softlabels[batch_indexs_labels]           # (B, C)
        soft_p = jnp.zeros((B_pad, C_pad), jnp.bfloat16).at[:B, :C].set(
            soft.astype(jnp.bfloat16))
        operands.append(soft_p)
        in_specs.append(pl.BlockSpec((TB, C_pad), lambda b, m: (b, 0)))

    part_struct = jax.ShapeDtypeStruct((nb, 1, 128), jnp.float32)
    part_spec = pl.BlockSpec((1, 1, 128), lambda b, m: (b, 0, 0))
    if has_soft:
        out_shape = (part_struct, part_struct)
        out_specs = (part_spec, part_spec)
    else:
        out_shape = part_struct
        out_specs = part_spec

    result = pl.pallas_call(
        _make_kernel(has_soft),
        out_shape=out_shape,
        grid=(nb, nm),
        in_specs=in_specs,
        out_specs=out_specs,
        scratch_shapes=[pltpu.VMEM((TB, Fd), compute_dtype),    # normalized feats (bank dtype)
                        pltpu.VMEM((TB, C_pad), jnp.float32)],  # per-cluster sum accumulator
        compiler_params=pltpu.CompilerParams(
            dimension_semantics=("parallel", "arbitrary"),      # megacore over batch blocks
            vmem_limit_bytes=int(vmem_limit_bytes)),
    )(*operands)

    inv_b = 1.0 / float(B)
    if has_soft:
        l1_part, l2_part = result
        loss1 = jnp.sum(l1_part[:, 0, 0]) * inv_b               # F.nll_loss (mean reduction)
        loss2 = jnp.sum(l2_part[:, 0, 0]) * inv_b               # (-soft * logp).mean(0).sum()
        return alpha_weight * loss1 + (1.0 - alpha_weight) * loss2
    return jnp.sum(result[:, 0, 0]) * inv_b


def _reference_forward(feat, indexes, memory_features, memory_labels, num_classes,
                       cur_epoch, sample_softlabels=None, batch_indexs_labels=None,
                       temp=0.05, alpha_weight=1.0):
    """Pure-JAX reference mirroring the PyTorch forward (for validation)."""
    x = feat.astype(jnp.float32)
    x = x / jnp.maximum(jnp.sqrt(jnp.sum(x * x, axis=1, keepdims=True)), 1e-12)
    logits_m = (x @ memory_features.astype(jnp.float32).T) / temp          # (B, M)
    one_hot_m = jax.nn.one_hot(memory_labels, num_classes, dtype=jnp.float32)
    sims = logits_m @ one_hot_m                                            # (B, C)
    counts = jnp.sum(one_hot_m, axis=0)
    denom = jnp.where(counts > 0, counts, 1.0)
    sim = sims / denom
    mask = (counts > 0).astype(jnp.float32)
    exps = jnp.exp(sim) * mask
    msum = jnp.sum(exps, axis=1, keepdims=True) + 1e-6
    logp = jnp.log(exps / msum + 1e-6)
    targets = memory_labels[indexes]
    loss1 = -jnp.mean(logp[jnp.arange(feat.shape[0]), targets])
    if cur_epoch == 0:
        return loss1
    soft = sample_softlabels[batch_indexs_labels].astype(jnp.float32)
    loss2 = jnp.sum(jnp.mean(-soft * logp, axis=0))
    return alpha_weight * loss1 + (1.0 - alpha_weight) * loss2


if __name__ == "__main__":
    # Small deterministic setup consistent with the module:
    #   num_features=64, num_memory=512, batch B=16, clusters C=24
    key = jax.random.PRNGKey(0)
    k1, k2, k3, k4, k5 = jax.random.split(key, 5)

    B, Fd, M, C = 16, 64, 512, 24
    num_samples = 64

    feat = jax.random.normal(k1, (B, Fd), dtype=jnp.float32)    # results['feat']

    # Memory bank (as populated by _update_feature): L2-normalized, stored bf16
    # so the kernel streams bf16 straight into the MXU.
    mem = jax.random.normal(k2, (M, Fd), dtype=jnp.float32)
    mem = mem / jnp.maximum(jnp.sqrt(jnp.sum(mem * mem, axis=1, keepdims=True)), 1e-12)
    mem = mem.astype(jnp.bfloat16)

    labels = jax.random.randint(k3, (M,), 0, C, dtype=jnp.int32)
    labels = labels.at[0].set(C - 1)                            # ensure max label == C-1

    indexes = jax.random.randint(k4, (B,), 0, M, dtype=jnp.int32)

    sample_softlabels = jax.nn.softmax(
        jax.random.normal(k5, (num_samples, C), dtype=jnp.float32), axis=-1)
    batch_indexs_labels = jnp.arange(B, dtype=jnp.int32)

    # tile_m=256 -> 2 memory-bank tiles: exercises the accumulate/finalize pipeline.
    loss_e0 = hybrid_memory_forward(
        feat, indexes, mem, labels, num_classes=C, cur_epoch=0,
        temp=0.05, tile_m=256)                                  # no soft-label stream compiled
    loss_e1 = hybrid_memory_forward(
        feat, indexes, mem, labels, num_classes=C, cur_epoch=1,
        sample_softlabels=sample_softlabels,
        batch_indexs_labels=batch_indexs_labels,
        temp=0.05, alpha_weight=0.7, tile_m=256)
    jax.block_until_ready((loss_e0, loss_e1))

    # Loose-tolerance validation vs. the pure-JAX reference (bf16 bank / MXU path).
    ref_e0 = _reference_forward(feat, indexes, mem, labels, C, 0, temp=0.05)
    ref_e1 = _reference_forward(feat, indexes, mem, labels, C, 1,
                                sample_softlabels=sample_softlabels,
                                batch_indexs_labels=batch_indexs_labels,
                                temp=0.05, alpha_weight=0.7)
    for got, want in ((loss_e0, ref_e0), (loss_e1, ref_e1)):
        err = abs(float(got) - float(want))
        assert err <= 5e-2 * abs(float(want)) + 5e-2, (float(got), float(want))

    print("KERNEL_OK")
</pallas_src>

<mosaic_0001>
module attributes {stable_mosaic.version = 11 : i64} {
  func.func @kernel(%arg0: i32, %arg1: i32, %arg2: memref<16x64xf32, #tpu.memory_space<vmem>>, %arg3: memref<256x64xbf16, #tpu.memory_space<vmem>>, %arg4: memref<256x1xi32, #tpu.memory_space<vmem>>, %arg5: memref<1x128xf32, #tpu.memory_space<vmem>>, %arg6: memref<1x128xf32, #tpu.memory_space<vmem>>, %arg7: memref<16x1xi32, #tpu.memory_space<vmem>>, %arg8: memref<1x1x128xf32, #tpu.memory_space<vmem>>, %arg9: memref<16x64xbf16, #tpu.memory_space<vmem>>, %arg10: memref<16x128xf32, #tpu.memory_space<vmem>>) attributes {dimension_semantics = [#tpu.dimension_semantics<parallel>, #tpu.dimension_semantics<arbitrary>], iteration_bounds = array<i64: 1, 2>, scalar_prefetch = 0 : i64, scratch_operands = 2 : i64, tpu.core_type = #tpu.core_type<tc>, window_params = [{transform_indices = @transform_0, window_bounds = array<i64: 16, 64>}, {transform_indices = @transform_1, window_bounds = array<i64: 256, 64>}, {transform_indices = @transform_2, window_bounds = array<i64: 256, 1>}, {pipeline_mode = #tpu.pipeline_mode<synchronous>, transform_indices = @transform_3, window_bounds = array<i64: 1, 128>}, {pipeline_mode = #tpu.pipeline_mode<synchronous>, transform_indices = @transform_4, window_bounds = array<i64: 1, 128>}, {transform_indices = @transform_5, window_bounds = array<i64: 16, 1>}, {transform_indices = @transform_6, window_bounds = array<i64: 1, 1, 128>}]} {
    %c0_i32 = arith.constant 0 : i32
    %0 = arith.cmpi eq, %arg1, %c0_i32 : i32
    %1 = arith.extui %0 : i1 to i32
    %c0_i32_0 = arith.constant 0 : i32
    %2 = arith.cmpi ne, %1, %c0_i32_0 : i32
    scf.if %2 {
      %c0_12 = arith.constant 0 : index
      %c0_13 = arith.constant 0 : index
      %21 = vector.load %arg2[%c0_12, %c0_13] : memref<16x64xf32, #tpu.memory_space<vmem>>, vector<16x64xf32>
      %22 = arith.mulf %21, %21 : vector<16x64xf32>
      %cst_14 = arith.constant dense<0.000000e+00> : vector<16xf32>
      %23 = vector.multi_reduction <add>, %22, %cst_14 [1] : vector<16x64xf32> to vector<16xf32>
      %24 = vector.shape_cast %23 : vector<16xf32> to vector<16x1xf32>
      %25 = math.sqrt %24 : vector<16x1xf32>
      %cst_15 = arith.constant 9.99999996E-13 : f32
      %26 = vector.broadcast %cst_15 : f32 to vector<16x1xf32>
      %27 = arith.maximumf %25, %26 : vector<16x1xf32>
      %28 = vector.broadcast %27 : vector<16x1xf32> to vector<16x64xf32>
      %29 = arith.divf %21, %28 : vector<16x64xf32>
      %30 = arith.truncf %29 : vector<16x64xf32> to vector<16x64xbf16>
      %c0_16 = arith.constant 0 : index
      %c0_17 = arith.constant 0 : index
      %31 = vector.load %arg9[%c0_16, %c0_17] : memref<16x64xbf16, #tpu.memory_space<vmem>>, vector<16x64xbf16>
      tpu.vector_store %arg9[%c0_16, %c0_17], %30 {strides = array<i32>} : memref<16x64xbf16, #tpu.memory_space<vmem>>, vector<16x64xbf16>,
      %cst_18 = arith.constant 0.000000e+00 : f32
      %32 = vector.broadcast %cst_18 : f32 to vector<16x128xf32>
      %c0_19 = arith.constant 0 : index
      %c0_20 = arith.constant 0 : index
      %33 = vector.load %arg10[%c0_19, %c0_20] : memref<16x128xf32, #tpu.memory_space<vmem>>, vector<16x128xf32>
      tpu.vector_store %arg10[%c0_19, %c0_20], %32 {strides = array<i32>} : memref<16x128xf32, #tpu.memory_space<vmem>>, vector<16x128xf32>,
    } else {
    }
    %c0 = arith.constant 0 : index
    %c0_1 = arith.constant 0 : index
    %3 = vector.load %arg3[%c0, %c0_1] : memref<256x64xbf16, #tpu.memory_space<vmem>>, vector<256x64xbf16>
    %c0_2 = arith.constant 0 : index
    %c0_3 = arith.constant 0 : index
    %4 = vector.load %arg9[%c0_2, %c0_3] : memref<16x64xbf16, #tpu.memory_space<vmem>>, vector<16x64xbf16>
    %cst = arith.constant dense<0.000000e+00> : vector<16x256xf32>
    %5 = tpu.matmul %4, %3, %cst {dimension_numbers = #tpu.dot_dimension_numbers<[1], [1], [0], [0], [0, 0, 1, 0], [], []>} : vector<16x64xbf16>, vector<256x64xbf16>, vector<16x256xf32> -> vector<16x256xf32>
    %c0_4 = arith.constant 0 : index
    %c0_5 = arith.constant 0 : index
    %6 = vector.load %arg4[%c0_4, %c0_5] : memref<256x1xi32, #tpu.memory_space<vmem>>, vector<256x1xi32>
    %7 = tpu.iota {dimensions = array<i32: 1>} : vector<256x128xi32>
    %8 = vector.broadcast %6 : vector<256x1xi32> to vector<256x128xi32>
    %9 = arith.cmpi eq, %8, %7 : vector<256x128xi32>
    %10 = arith.extui %9 : vector<256x128xi1> to vector<256x128xi32>
    %11 = arith.sitofp %10 : vector<256x128xi32> to vector<256x128xf32>
    %12 = arith.truncf %11 : vector<256x128xf32> to vector<256x128xbf16>
    %c0_6 = arith.constant 0 : index
    %c0_7 = arith.constant 0 : index
    %13 = vector.load %arg10[%c0_6, %c0_7] : memref<16x128xf32, #tpu.memory_space<vmem>>, vector<16x128xf32>
    %14 = arith.truncf %5 : vector<16x256xf32> to vector<16x256xbf16>
    %cst_8 = arith.constant dense<0.000000e+00> : vector<16x128xf32>
    %15 = tpu.matmul %14, %12, %cst_8 {dimension_numbers = #tpu.dot_dimension_numbers<[1], [0], [0], [1], [0, 0, 1, 1], [], []>} : vector<16x256xbf16>, vector<256x128xbf16>, vector<16x128xf32> -> vector<16x128xf32>
    %16 = arith.addf %13, %15 : vector<16x128xf32>
    %c0_9 = arith.constant 0 : index
    %c0_10 = arith.constant 0 : index
    %17 = vector.load %arg10[%c0_9, %c0_10] : memref<16x128xf32, #tpu.memory_space<vmem>>, vector<16x128xf32>
    tpu.vector_store %arg10[%c0_9, %c0_10], %16 {strides = array<i32>} : memref<16x128xf32, #tpu.memory_space<vmem>>, vector<16x128xf32>,
    %c1_i32 = arith.constant 1 : i32
    %18 = arith.cmpi eq, %arg1, %c1_i32 : i32
    %19 = arith.extui %18 : i1 to i32
    %c0_i32_11 = arith.constant 0 : i32
    %20 = arith.cmpi ne, %19, %c0_i32_11 : i32
    scf.if %20 {
      %c0_12 = arith.constant 0 : index
      %c0_13 = arith.constant 0 : index
      %21 = vector.load %arg6[%c0_12, %c0_13] : memref<1x128xf32, #tpu.memory_space<vmem>>, vector<1x128xf32>
      %c0_14 = arith.constant 0 : index
      %c0_15 = arith.constant 0 : index
      %22 = vector.load %arg10[%c0_14, %c0_15] : memref<16x128xf32, #tpu.memory_space<vmem>>, vector<16x128xf32>
      %c0_16 = arith.constant 0 : index
      %c0_17 = arith.constant 0 : index
      %23 = vector.load %arg5[%c0_16, %c0_17] : memref<1x128xf32, #tpu.memory_space<vmem>>, vector<1x128xf32>
      %24 = vector.broadcast %23 : vector<1x128xf32> to vector<16x128xf32>
      %25 = arith.mulf %22, %24 : vector<16x128xf32>
      %26 = math.exp %25 : vector<16x128xf32>
      %27 = vector.broadcast %21 : vector<1x128xf32> to vector<16x128xf32>
      %28 = arith.mulf %26, %27 : vector<16x128xf32>
      %cst_18 = arith.constant dense<0.000000e+00> : vector<16xf32>
      %29 = vector.multi_reduction <add>, %28, %cst_18 [1] : vector<16x128xf32> to vector<16xf32>
      %30 = vector.shape_cast %29 : vector<16xf32> to vector<16x1xf32>
      %cst_19 = arith.constant 9.99999997E-7 : f32
      %31 = vector.broadcast %cst_19 : f32 to vector<16x1xf32>
      %32 = arith.addf %30, %31 : vector<16x1xf32>
      %33 = tpu.reciprocal %32 {approx = true} : vector<16x1xf32> -> vector<16x1xf32>
      %34 = vector.broadcast %33 : vector<16x1xf32> to vector<16x128xf32>
      %35 = arith.mulf %28, %34 : vector<16x128xf32>
      %cst_20 = arith.constant 9.99999997E-7 : f32
      %36 = vector.broadcast %cst_20 : f32 to vector<16x128xf32>
      %37 = arith.addf %35, %36 : vector<16x128xf32>
      %38 = math.log %37 : vector<16x128xf32>
      %c0_21 = arith.constant 0 : index
      %c0_22 = arith.constant 0 : index
      %39 = vector.load %arg7[%c0_21, %c0_22] : memref<16x1xi32, #tpu.memory_space<vmem>>, vector<16x1xi32>
      %40 = tpu.iota {dimensions = array<i32: 1>} : vector<16x128xi32>
      %41 = vector.broadcast %39 : vector<16x1xi32> to vector<16x128xi32>
      %42 = arith.cmpi eq, %41, %40 : vector<16x128xi32>
      %43 = arith.extui %42 : vector<16x128xi1> to vector<16x128xi32>
      %44 = arith.sitofp %43 : vector<16x128xi32> to vector<16x128xf32>
      %45 = arith.mulf %44, %38 : vector<16x128xf32>
      %46 = vector.shape_cast %45 : vector<16x128xf32> to vector<1x16x128xf32>
      %cst_23 = arith.constant dense<0.000000e+00> : vector<1xf32>
      %47 = vector.multi_reduction <add>, %46, %cst_23 [1, 2] : vector<1x16x128xf32> to vector<1xf32>
      %48 = vector.shape_cast %47 : vector<1xf32> to vector<1x1x1xf32>
      %49 = vector.extract %48[0, 0, 0] : f32 from vector<1x1x1xf32>
      %cst_24 = arith.constant 0.000000e+00 : f32
      %50 = arith.subf %cst_24, %49 : f32
      %51 = vector.broadcast %50 : f32 to vector<1x1x128xf32>
      %c0_25 = arith.constant 0 : index
      %c0_26 = arith.constant 0 : index
      %c0_27 = arith.constant 0 : index
      %52 = vector.load %arg8[%c0_25, %c0_26, %c0_27] : memref<1x1x128xf32, #tpu.memory_space<vmem>>, vector<1x1x128xf32>
      tpu.vector_store %arg8[%c0_25, %c0_26, %c0_27], %51 {strides = array<i32>} : memref<1x1x128xf32, #tpu.memory_space<vmem>>, vector<1x1x128xf32>,
    } else {
    }
    return
  }
  func.func @transform_0(%arg0: i32, %arg1: i32) -> (i32, i32) {
    %c0_i32 = arith.constant 0 : i32
    %c0_i32_0 = arith.constant 0 : i32
    return %arg0, %c0_i32 : i32, i32
  }
  func.func @transform_1(%arg0: i32, %arg1: i32) -> (i32, i32) {
    %c0_i32 = arith.constant 0 : i32
    %c0_i32_0 = arith.constant 0 : i32
    return %arg1, %c0_i32 : i32, i32
  }
  func.func @transform_2(%arg0: i32, %arg1: i32) -> (i32, i32) {
    %c0_i32 = arith.constant 0 : i32
    %c0_i32_0 = arith.constant 0 : i32
    return %arg1, %c0_i32 : i32, i32
  }
  func.func @transform_3(%arg0: i32, %arg1: i32) -> (i32, i32) {
    %c0_i32 = arith.constant 0 : i32
    %c0_i32_0 = arith.constant 0 : i32
    %c0_i32_1 = arith.constant 0 : i32
    return %c0_i32, %c0_i32_0 : i32, i32
  }
  func.func @transform_4(%arg0: i32, %arg1: i32) -> (i32, i32) {
    %c0_i32 = arith.constant 0 : i32
    %c0_i32_0 = arith.constant 0 : i32
    %c0_i32_1 = arith.constant 0 : i32
    return %c0_i32, %c0_i32_0 : i32, i32
  }
  func.func @transform_5(%arg0: i32, %arg1: i32) -> (i32, i32) {
    %c0_i32 = arith.constant 0 : i32
    %c0_i32_0 = arith.constant 0 : i32
    return %arg0, %c0_i32 : i32, i32
  }
  func.func @transform_6(%arg0: i32, %arg1: i32) -> (i32, i32, i32) {
    %c0_i32 = arith.constant 0 : i32
    %c0_i32_0 = arith.constant 0 : i32
    %c0_i32_1 = arith.constant 0 : i32
    return %arg0, %c0_i32, %c0_i32_0 : i32, i32, i32
  }
}

</mosaic_0001>

<bundles_post_ra>
// kernel: tpu_custom_call.1
= control target key start
LH: loop header
LB: loop body
LE: loop exit
PB: predicated region body
PF: predicated region fallthrough
CT: control target
= control target key end

     0   :  { %11 = vsyncpa [#allocation5], 0  ;;  %s1377_s21 = smov 0   ;;  %s1379_s22 = smov 0   ;;  %s1568_s0 = inlined_call_operand.vmem [shape: f32[16,64], index: 0, kind: input, shape index: {}]   ;;  %s1569_s1 = inlined_call_operand.vmem [shape: bf16[512,64], index: 1, kind: input, shape index: {}]   ;;  %s1570_s2 = inlined_call_operand.vmem [shape: s32[512,1], index: 2, kind: input, shape index: {}]   ;;  %s1571_s3 = inlined_call_operand.vmem [shape: f32[1,128], index: 3, kind: input, shape index: {}]   ;;  %s1572_s4 = inlined_call_operand.vmem [shape: f32[1,128], index: 4, kind: input, shape index: {}]   ;;  %s1573_s5 = inlined_call_operand.vmem [shape: s32[16,1], index: 5, kind: input, shape index: {}]   ;;  %s1574_s6 = inlined_call_operand.hbm [shape: f32[1,1,128], index: 6, kind: output, shape index: {}]  }
   0x1   :  { %s1381_s23 = smov 0  }
   0x2 LB: > { %s1046_s24 = sadd.s32 4294967295, %s1334_s23   ;;  %s26_s25 = sadd.s32 1, %s1330_s22  ;;  %s1334_s23 = sphi %s1381_s23, %s17_s23   ;;  %s1330_s22 = sphi %s1379_s22, %s1576_s22   ;;  %s1326_s21 = sphi %s1377_s21, %s1575_s21  }
   0x3   : > { %p27_p0 = scmp.ge.s32.totalorder %s26_s25, 2  ;;  %p1051_p1 = scmp.ge.s32.totalorder %s1334_s23, 1 }
   0x4   : > { %p259_p2 = scmp.lt.s32.totalorder %s1334_s23, 3 }
   0x5   : > { %s1578_s25 = smov (%p27_p0, %s26_s25), 0 }
   0x6   : > { %p260_p3 = pnand %p1051_p1, %p259_p2 }
   0x7   : > { %s1052_s26 = sshll.u32 (!%p260_p3), %s1326_s21, 5  ;;  %p1056_p5 = scmp.ne.s32.totalorder (!%p260_p3), %s1326_s21, 0 }
   0x8   : > { %263 = sbr.rel (%p260_p3) target bundleno = 892 (0x37c), region = 44  ;;  %p306_p4 = scmp.lt.s32.totalorder (!%p260_p3), %s1052_s26, 63 }
   0xd   : > { %s1580_s26 = smov (!%p306_p4, %s1052_s26), 63  ;;  %326 = sbr.rel (%p1056_p5) target bundleno = 191 (0xbf), region = 48 }
   0xe   : > { %s1053_s27 = sshll.u32 %s1580_s26, 2  ;;  %s1055_s28 = sshll.u32 %s1580_s26, 3 }
   0xf   : > { %s1402_s7 = scalar_lea.vmem %s1569_s1, %s1053_s27  ;;  %s1407_s10 = scalar_lea.vmem %s1570_s2, %s1055_s28 }
  0x12   : > { %v327_v0 = vld [vmem:[%s1568_s0] sm:$0xff]  ;;  %vm331_vm0 = vcmask 523264   ;;  %v1416_v2 = vld [vmem:[%s1568_s0 + $0x8] sm:$0xff]  ;;  %v1336_v24 = vmov 0.0   ;;  %vm396_vm9 = vcmask 519168  }
  0x13   : > { %v329_v1 = vmul.f32 %v327_v0, %v327_v0  ;;  %v330_v4 = vmul.f32 %v1416_v2, %v1416_v2  ;;  %399 = vst [vmem:[#allocation3] sm:$0xff] %v1336_v24 }
  0x14   : > { %400 = vst [vmem:[#allocation3 + $0x8] sm:$0xff] %v1336_v24 }
  0x15   : > { %v332_v3 = vsel %vm331_vm0, %v329_v1, 0.0  ;;  %v335_v5 = vsel %vm331_vm0, %v330_v4, 0.0 }
  0x16   : > { %333 = vadd.xlane.f32.xlu0 %v332_v3 }
  0x1e   : > { %336 = vadd.xlane.f32.xlu0 %v335_v5 }
  0x89   : > { %v334_v6 = vpop.xlane.xlu0 %333 }
  0x8a   : > { %1253 = vrsqrt.f32 %v334_v6  ;;  %vm345_vm1 = vcmp.eq.f32.partialorder %v334_v6, inf  ;;  %v348_v18 = vand.u32 2147483648, %v334_v6  ;;  %vm347_vm2 = vcmp.eq.f32.partialorder %v334_v6, 0.0 }
  0x90   : > { %v1254_v7 = vpop.eup %1253 }
  0x91   : > { %v339_v8 = vmul.f32 %v1254_v7, %v334_v6  ;;  %v337_v9 = vpop.xlane.xlu0 %336 }
  0x92   : > { %1255 = vrsqrt.f32 %v337_v9  ;;  %vm357_vm3 = vcmp.eq.f32.partialorder %v337_v9, inf  ;;  %v360_v27 = vand.u32 2147483648, %v337_v9  ;;  %vm359_vm4 = vcmp.eq.f32.partialorder %v337_v9, 0.0 }
  0x93   : > { %v340_v10 = vmul.f32 %v1254_v7, %v339_v8 }
  0x95   : > { %v341_v11 = vmul.f32 0.5, %v340_v10 }
  0x97   : > { %v342_v12 = vsub.f32 1.5, %v341_v11 }
  0x98   : > { %v1256_v13 = vpop.eup %1255 }
  0x99   : > { %v343_v14 = vmul.f32 %v1254_v7, %v342_v12  ;;  %v351_v15 = vmul.f32 %v1256_v13, %v337_v9 }
  0x9b   : > { %v344_v16 = vmul.f32 %v343_v14, %v334_v6  ;;  %v352_v17 = vmul.f32 %v1256_v13, %v351_v15 }
  0x9d   : > { %v346_v19 = vsel %vm345_vm1, %v334_v6, %v344_v16  ;;  %v353_v20 = vmul.f32 0.5, %v352_v17 }
  0x9e   : > { %v349_v21 = vsel %vm347_vm2, %v348_v18, %v346_v19 }
  0x9f   : > { %v362_v22 = vmax.f32 %v349_v21, 1e-12  ;;  %v354_v23 = vsub.f32 1.5, %v353_v20 }
  0xa1   : > { %1257 = vrcp.f32 %v362_v22  ;;  %v355_v25 = vmul.f32 %v1256_v13, %v354_v23  ;;  %v375_v34 = vand.u32 2147483648, %v362_v22  ;;  %v373_v36 = vand.u32 2147483647, %v362_v22 }
  0xa2   : > { %vm369_vm6 = vweird.f32 %v362_v22 }
  0xa3   : > { %v356_v26 = vmul.f32 %v355_v25, %v337_v9  ;;  %v376_v38 = vor.u32 1.1754944e-38, %v375_v34  ;;  %vm374_vm8 = vcmp.eq.f32.partialorder %v373_v36, 8.507059e+37 }
  0xa5   : > { %v358_v28 = vsel %vm357_vm3, %v337_v9, %v356_v26 }
  0xa6   : > { %v361_v30 = vsel %vm359_vm4, %v360_v27, %v358_v28 }
  0xa7   : > { %v1258_v29 = vpop.eup %1257  ;;  %v363_v32 = vmax.f32 %v361_v30, 1e-12 }
  0xa8   : > { %v365_v31 = vmul.f32 %v1258_v29, %v362_v22  ;;  %vm370_vm5 = vweird.f32 %v1258_v29 }
  0xa9   : > { %1259 = vrcp.f32 %v363_v32  ;;  %vm371_vm7 = vmor %vm369_vm6, %vm370_vm5  ;;  %v390_v46 = vand.u32 2147483648, %v363_v32  ;;  %v388_v48 = vand.u32 2147483647, %v363_v32  ;;  %vm384_vm11 = vweird.f32 %v363_v32 }
  0xaa   : > { %v366_v33 = vsub.f32 1.0, %v365_v31 }
  0xab   : > { %v391_v50 = vor.u32 1.1754944e-38, %v390_v46  ;;  %vm389_vm13 = vcmp.eq.f32.partialorder %v388_v48, 8.507059e+37 }
  0xac   : > { %v367_v35 = vmul.f32 %v1258_v29, %v366_v33 }
  0xae   : > { %v368_v37 = vadd.f32 %v1258_v29, %v367_v35 }
  0xaf   : > { %v1260_v39 = vpop.eup %1259 }
  0xb0   : > { %v372_v40 = vsel %vm371_vm7, %v1258_v29, %v368_v37  ;;  %v380_v42 = vmul.f32 %v1260_v39, %v363_v32  ;;  %vm385_vm10 = vweird.f32 %v1260_v39 }
  0xb1   : > { %v377_v41 = vsel %vm374_vm8, %v376_v38, %v372_v40  ;;  %vm386_vm12 = vmor %vm384_vm11, %vm385_vm10 }
  0xb2   : > { %v378_v43 = vmul.f32 %v377_v41, %v327_v0  ;;  %v381_v44 = vsub.f32 1.0, %v380_v42 }
  0xb4   : > { %v394_v45 = vpack.c.bf16 %v378_v43, %v378_v43  ;;  %v382_v47 = vmul.f32 %v1260_v39, %v381_v44 }
  0xb6   : > { %397 = vst.msk [vmem:[#allocation2] sm:$0xf] %vm396_vm9, %v394_v45  ;;  %v383_v49 = vadd.f32 %v1260_v39, %v382_v47 }
  0xb8   : > { %v387_v51 = vsel %vm386_vm12, %v1260_v39, %v383_v49 }
  0xb9   : > { %v392_v52 = vsel %vm389_vm13, %v391_v50, %v387_v51 }
  0xba   : > { %v393_v53 = vmul.f32 %v392_v52, %v1416_v2 }
  0xbc   : > { %v395_v54 = vpack.c.bf16 %v393_v53, %v393_v53 }
  0xbe   : > { %398 = vst.msk [vmem:[#allocation2 + $0x4] sm:$0xf] %vm396_vm9, %v395_v54 }
  0xbf PF: > { %v630_v55 = vld [vmem:[%s1407_s10 + $0xf0] sm:$0xff]  ;;  %v612_v57 = vld [vmem:[%s1407_s10 + $0x60] sm:$0xff]  ;;  %vm520_vm14 = vcmask 523264   ;;  %v1337_v58 = vmov 0   ;;  %v1205_v59 = vld [vmem:[%s1402_s7 + $0x38] sm:$0xff]  ;;  %p1191_p6 = scmp.ne.s32.totalorder %s1326_s21, 1 }
  0xc0   : > { %v614_v56 = vld [vmem:[%s1407_s10 + $0x70] sm:$0xff]  ;;  %1263 = vset.pattern.permute.xlu2 %v1337_v58  ;;  %1262 = vset.pattern.permute.xlu1 %v1337_v58  ;;  %v1213_v60 = vld [vmem:[%s1402_s7 + $0x78] sm:$0xff]  ;;  %v546_v61 = vsel %vm520_vm14, %v1205_v59, 0  ;;  %v613_v3 = vld [vmem:[%s1407_s10 + $0x68] sm:$0xff] }
  0xc1   : > { %1261 = vset.pattern.permute.xlu0 %v1337_v58  ;;  %725 = vperm.xlu1 %1262, %v630_v55   ;;  %v570_v62 = vsel %vm520_vm14, %v1213_v60, 0  ;;  %v1204_v63 = vld [vmem:[%s1402_s7 + $0x30] sm:$0xff]  ;;  %v631_v1 = vld [vmem:[%s1407_s10 + $0xf8] sm:$0xff]  ;;  %v1203_v6 = vld [vmem:[%s1402_s7 + $0x28] sm:$0xff] }
  0xc2   : > { %677 = vperm.xlu0 %1261, %v614_v56   ;;  %671 = vperm.xlu2 %1263, %v612_v57   ;;  %v1212_v0 = vld [vmem:[%s1402_s7 + $0x70] sm:$0xff]  ;;  %v615_v2 = vld [vmem:[%s1407_s10 + $0x78] sm:$0xff]  ;;  %v543_v4 = vsel %vm520_vm14, %v1204_v63, 0  ;;  %v1211_v7 = vld [vmem:[%s1402_s7 + $0x68] sm:$0xff]  ;;  %v540_v11 = vsel %vm520_vm14, %v1203_v6, 0 }
  0xc3   : > { %572 = vmatpush.bf16.xpose.msra.mxu0 %v546_v61  ;;  %586 = vmatpush.bf16.xpose.msra.mxu1 %v570_v62  ;;  %v567_v5 = vsel %vm520_vm14, %v1212_v0, 0  ;;  %v629_v8 = vld [vmem:[%s1407_s10 + $0xe8] sm:$0xff]  ;;  %v628_v9 = vld [vmem:[%s1407_s10 + $0xe0] sm:$0xff]  ;;  %v610_v10 = vld [vmem:[%s1407_s10 + $0x50] sm:$0xff]  ;;  %v564_v12 = vsel %vm520_vm14, %v1211_v7, 0  ;;  %v632_v61 = vlaneseq }
  0xc4   : > { %v1202_v13 = vld [vmem:[%s1402_s7 + $0x20] sm:$0xff]  ;;  %v626_v15 = vld [vmem:[%s1407_s10 + $0xd0] sm:$0xff]  ;;  %v611_v16 = vld [vmem:[%s1407_s10 + $0x58] sm:$0xff] }
  0xc5   : > { %v1210_v14 = vld [vmem:[%s1402_s7 + $0x60] sm:$0xff]  ;;  %v627_v17 = vld [vmem:[%s1407_s10 + $0xd8] sm:$0xff]  ;;  %v537_v18 = vsel %vm520_vm14, %v1202_v13, 0  ;;  %v609_v22 = vld [vmem:[%s1407_s10 + $0x48] sm:$0xff]  ;;  %v1489_v63 = vand.u32 127, %v632_v61 }
  0xc6   : > { %v561_v19 = vsel %vm520_vm14, %v1210_v14, 0  ;;  %v1201_v20 = vld [vmem:[%s1402_s7 + $0x18] sm:$0xff]  ;;  %v624_v23 = vld [vmem:[%s1407_s10 + $0xc0] sm:$0xff]  ;;  %v1200_v27 = vld [vmem:[%s1402_s7 + $0x10] sm:$0xff] }
  0xc7   : > { %v1209_v21 = vld [vmem:[%s1402_s7 + $0x58] sm:$0xff]  ;;  %v608_v24 = vld [vmem:[%s1407_s10 + $0x40] sm:$0xff]  ;;  %v534_v25 = vsel %vm520_vm14, %v1201_v20, 0  ;;  %v1208_v28 = vld [vmem:[%s1402_s7 + $0x50] sm:$0xff]  ;;  %v531_v32 = vsel %vm520_vm14, %v1200_v27, 0 }
  0xc8   : > { %v558_v26 = vsel %vm520_vm14, %v1209_v21, 0  ;;  %v606_v29 = vld [vmem:[%s1407_s10 + $0x30] sm:$0xff]  ;;  %v625_v30 = vld [vmem:[%s1407_s10 + $0xc8] sm:$0xff]  ;;  %v607_v31 = vld [vmem:[%s1407_s10 + $0x38] sm:$0xff]  ;;  %v555_v33 = vsel %vm520_vm14, %v1208_v28, 0 }
  0xc9   : > { %728 = vperm.xlu1 %1262, %v631_v1   ;;  %v1199_v34 = vld [vmem:[%s1402_s7 + $0x8] sm:$0xff]  ;;  %v623_v36 = vld [vmem:[%s1407_s10 + $0xb8] sm:$0xff]  ;;  %v622_v37 = vld [vmem:[%s1407_s10 + $0xb0] sm:$0xff] }
  0xca   : > { %680 = vperm.xlu0 %1261, %v615_v2   ;;  %674 = vperm.xlu2 %1263, %v613_v3   ;;  %v1207_v35 = vld [vmem:[%s1402_s7 + $0x48] sm:$0xff]  ;;  %v604_v38 = vld [vmem:[%s1407_s10 + $0x20] sm:$0xff]  ;;  %v528_v39 = vsel %vm520_vm14, %v1199_v34, 0  ;;  %v603_v48 = vld [vmem:[%s1407_s10 + $0x18] sm:$0xff]  ;;  %v1338_v3 = vmov 1.0|1.0  }
  0xcb   : > { %573 = vmatpush.bf16.xpose.msra.mxu0 %v543_v4  ;;  %587 = vmatpush.bf16.xpose.msra.mxu1 %v567_v5  ;;  %v552_v40 = vsel %vm520_vm14, %v1207_v35, 0  ;;  %v1198_v41 = vld [vmem:[%s1402_s7] sm:$0xff]  ;;  %v605_v44 = vld [vmem:[%s1407_s10 + $0x28] sm:$0xff]  ;;  %v618_v49 = vld [vmem:[%s1407_s10 + $0x90] sm:$0xff] }
  0xcc   : > { %v1206_v42 = vld [vmem:[%s1402_s7 + $0x40] sm:$0xff]  ;;  %v621_v45 = vld [vmem:[%s1407_s10 + $0xa8] sm:$0xff]  ;;  %v525_v46 = vsel %vm520_vm14, %v1198_v41, 0  ;;  %v602_v50 = vld [vmem:[%s1407_s10 + $0x10] sm:$0xff] }
  0xcd   : > { %v620_v43 = vld [vmem:[%s1407_s10 + $0xa0] sm:$0xff]  ;;  %v549_v47 = vsel %vm520_vm14, %v1206_v42, 0  ;;  %v619_v53 = vld [vmem:[%s1407_s10 + $0x98] sm:$0xff]  ;;  %v601_v54 = vld [vmem:[%s1407_s10 + $0x8] sm:$0xff] }
  0xce   : > { %v1214_v51 = vld [vmem:[#allocation2] sm:$0xff]  ;;  %v617_v55 = vld [vmem:[%s1407_s10 + $0x88] sm:$0xff] }
  0xcf   : > { %v600_v52 = vld [vmem:[%s1407_s10] sm:$0xff]  ;;  %v842_v35 = vld [vmem:[#allocation3] sm:$0xff] }
  0xd0   : > { %v616_v56 = vld [vmem:[%s1407_s10 + $0x80] sm:$0xff] }
  0xd1   : > { %722 = vperm.xlu1 %1262, %v629_v8  }
  0xd2   : > { %719 = vperm.xlu0 %1261, %v628_v9   ;;  %665 = vperm.xlu2 %1263, %v610_v10  }
  0xd3   : > { %574 = vmatpush.bf16.xpose.msra.mxu0 %v540_v11  ;;  %588 = vmatpush.bf16.xpose.msra.mxu1 %v564_v12 }
  0xd9   : > { %713 = vperm.xlu1 %1262, %v626_v15  }
  0xda   : > { %668 = vperm.xlu0 %1261, %v611_v16   ;;  %716 = vperm.xlu2 %1263, %v627_v17  }
  0xdb   : > { %575 = vmatpush.bf16.xpose.msra.mxu0 %v537_v18  ;;  %589 = vmatpush.bf16.xpose.msra.mxu1 %v561_v19 }
  0xe1   : > { %662 = vperm.xlu1 %1262, %v609_v22  }
  0xe2   : > { %707 = vperm.xlu2 %1263, %v624_v23   ;;  %659 = vperm.xlu0 %1261, %v608_v24  }
  0xe3   : > { %576 = vmatpush.bf16.xpose.msra.mxu0 %v534_v25  ;;  %590 = vmatpush.bf16.xpose.msra.mxu1 %v558_v26 }
  0xe9   : > { %653 = vperm.xlu1 %1262, %v606_v29  }
  0xea   : > { %710 = vperm.xlu0 %1261, %v625_v30   ;;  %656 = vperm.xlu2 %1263, %v607_v31  }
  0xeb   : > { %577 = vmatpush.bf16.xpose.msra.mxu0 %v531_v32  ;;  %591 = vmatpush.bf16.xpose.msra.mxu1 %v555_v33 }
  0xf1   : > { %704 = vperm.xlu1 %1262, %v623_v36  }
  0xf2   : > { %701 = vperm.xlu0 %1261, %v622_v37   ;;  %647 = vperm.xlu2 %1263, %v604_v38  }
  0xf3   : > { %578 = vmatpush.bf16.xpose.msra.mxu0 %v528_v39  ;;  %592 = vmatpush.bf16.xpose.msra.mxu1 %v552_v40  ;;  %v843_v40 = vld [vmem:[#allocation3 + $0x8] sm:$0xff] }
  0xf9   : > { %695 = vperm.xlu1 %1262, %v620_v43  }
  0xfa   : > { %650 = vperm.xlu0 %1261, %v605_v44   ;;  %698 = vperm.xlu2 %1263, %v621_v45  }
  0xfb   : > { %579 = vmatpush.bf16.xpose.msra.mxu0 %v525_v46  ;;  %593 = vmatpush.bf16.xpose.msra.mxu1 %v549_v47 }
 0x101   : > { %644 = vperm.xlu1 %1262, %v603_v48  }
 0x102   : > { %689 = vperm.xlu2 %1263, %v618_v49   ;;  %641 = vperm.xlu0 %1261, %v602_v50  }
 0x103   : > { %1125 = vmatmul.msk.bf16.vlgmr.msra.gmra.mxu0 %vm520_vm14, %v1214_v51  ;;  %1126 = vmatmul.msk.bf16.vlgmr.msra.gmra.mxu1 %vm520_vm14, %v1214_v51 }
 0x109   : > { %635 = vperm.xlu1 %1262, %v600_v52  }
 0x10a   : > { %692 = vperm.xlu0 %1261, %v619_v53   ;;  %638 = vperm.xlu2 %1263, %v601_v54  }
 0x111   : > { %686 = vperm.xlu1 %1262, %v617_v55  }
 0x112   : > { %683 = vperm.xlu0 %1261, %v616_v56  }
 0x11c   : > { %v672_v57 = vpop.permute.xlu2 %671 }
 0x11d   : > { %vm742_vm5 = vcmp.eq.s32.totalorder %v672_v57, %v1489_v63 }
 0x124   : > { %v675_v58 = vpop.permute.xlu2 %674 }
 0x125   : > { %vm743_vm6 = vcmp.eq.s32.totalorder %v675_v58, %v1489_v63 }
 0x126   : > { %vm1161_vm7 = vmpackc.low %vm743_vm6, %vm742_vm5 }
 0x12c   : > { %v666_v59 = vpop.permute.xlu2 %665 }
 0x12d   : > { %vm740_vm13 = vcmp.eq.s32.totalorder %v666_v59, %v1489_v63 }
 0x133   : > { %v726_v60 = vpop.permute.xlu1 %725 }
 0x134   : > { %v678_v62 = vpop.permute.xlu0 %677  ;;  %vm760_vm15 = vcmp.eq.s32.totalorder %v726_v60, %v1489_v63  ;;  %v717_v2 = vpop.permute.xlu2 %716 }
 0x135   : > { %vm744_vm1 = vcmp.eq.s32.totalorder %v678_v62, %v1489_v63  ;;  %vm757_vm11 = vcmp.eq.s32.totalorder %v717_v2, %v1489_v63 }
 0x13b   : > { %v729_v0 = vpop.permute.xlu1 %728 }
 0x13c   : > { %vm761_vm0 = vcmp.eq.s32.totalorder %v729_v0, %v1489_v63  ;;  %v681_v1 = vpop.permute.xlu0 %680  ;;  %v708_v6 = vpop.permute.xlu2 %707 }
 0x13d   : > { %vm745_vm2 = vcmp.eq.s32.totalorder %v681_v1, %v1489_v63  ;;  %vm1175_vm3 = vmpackc.low %vm761_vm0, %vm760_vm15  ;;  %vm754_vm6 = vcmp.eq.s32.totalorder %v708_v6, %v1489_v63 }
 0x13e   : > { %vm1159_vm4 = vmpackc.low %vm745_vm2, %vm744_vm1  ;;  %1176 = vmatpush.bf16.msk.msra.mxu3 %vm1175_vm3, %v1338_v3 }
 0x13f   : > { %1160 = vmatpush.bf16.msk.msra.mxu2 %vm1159_vm4, %v1338_v3 }
 0x143   : > { %1162 = vmatpush.bf16.msk.msra.mxu2 %vm1161_vm7, %v1338_v3  ;;  %v723_v4 = vpop.permute.xlu1 %722 }
 0x144   : > { %vm759_vm8 = vcmp.eq.s32.totalorder %v723_v4, %v1489_v63  ;;  %v720_v5 = vpop.permute.xlu0 %719  ;;  %v657_v9 = vpop.permute.xlu2 %656 }
 0x145   : > { %vm758_vm9 = vcmp.eq.s32.totalorder %v720_v5, %v1489_v63  ;;  %vm737_vm4 = vcmp.eq.s32.totalorder %v657_v9, %v1489_v63 }
 0x146   : > { %vm1177_vm10 = vmpackc.low %vm759_vm8, %vm758_vm9 }
 0x147   : > { %1178 = vmatpush.bf16.msk.msra.mxu3 %vm1177_vm10, %v1338_v3 }
 0x14b   : > { %v714_v7 = vpop.permute.xlu1 %713 }
 0x14c   : > { %vm756_vm12 = vcmp.eq.s32.totalorder %v714_v7, %v1489_v63  ;;  %v669_v8 = vpop.permute.xlu0 %668  ;;  %v648_v12 = vpop.permute.xlu2 %647 }
 0x14d   : > { %vm1179_vm14 = vmpackc.low %vm757_vm11, %vm756_vm12  ;;  %vm741_vm15 = vcmp.eq.s32.totalorder %v669_v8, %v1489_v63 }
 0x14e   : > { %vm1163_vm0 = vmpackc.low %vm741_vm15, %vm740_vm13  ;;  %1180 = vmatpush.bf16.msk.msra.mxu3 %vm1179_vm14, %v1338_v3  ;;  %vm734_vm15 = vcmp.eq.s32.totalorder %v648_v12, %v1489_v63 }
 0x14f   : > { %1164 = vmatpush.bf16.msk.msra.mxu2 %vm1163_vm0, %v1338_v3 }
 0x153   : > { %v663_v10 = vpop.permute.xlu1 %662 }
 0x154   : > { %vm739_vm1 = vcmp.eq.s32.totalorder %v663_v10, %v1489_v63  ;;  %v660_v11 = vpop.permute.xlu0 %659  ;;  %v699_v17 = vpop.permute.xlu2 %698 }
 0x155   : > { %vm738_vm2 = vcmp.eq.s32.totalorder %v660_v11, %v1489_v63  ;;  %vm751_vm13 = vcmp.eq.s32.totalorder %v699_v17, %v1489_v63 }
 0x156   : > { %vm1165_vm3 = vmpackc.low %vm739_vm1, %vm738_vm2 }
 0x157   : > { %1166 = vmatpush.bf16.msk.msra.mxu2 %vm1165_vm3, %v1338_v3 }
 0x15b   : > { %v654_v13 = vpop.permute.xlu1 %653 }
 0x15c   : > { %v711_v14 = vpop.permute.xlu0 %710  ;;  %vm736_vm5 = vcmp.eq.s32.totalorder %v654_v13, %v1489_v63  ;;  %v690_v20 = vpop.permute.xlu2 %689 }
 0x15d   : > { %vm755_vm7 = vcmp.eq.s32.totalorder %v711_v14, %v1489_v63  ;;  %vm1167_vm8 = vmpackc.low %vm737_vm4, %vm736_vm5 }
 0x15e   : > { %vm1181_vm9 = vmpackc.low %vm755_vm7, %vm754_vm6  ;;  %1168 = vmatpush.bf16.msk.msra.mxu2 %vm1167_vm8, %v1338_v3  ;;  %vm748_vm8 = vcmp.eq.s32.totalorder %v690_v20, %v1489_v63 }
 0x15f   : > { %1182 = vmatpush.bf16.msk.msra.mxu3 %vm1181_vm9, %v1338_v3 }
 0x163   : > { %v705_v15 = vpop.permute.xlu1 %704 }
 0x164   : > { %v702_v16 = vpop.permute.xlu0 %701  ;;  %vm753_vm10 = vcmp.eq.s32.totalorder %v705_v15, %v1489_v63  ;;  %v639_v23 = vpop.permute.xlu2 %638 }
 0x165   : > { %vm752_vm11 = vcmp.eq.s32.totalorder %v702_v16, %v1489_v63  ;;  %vm731_vm6 = vcmp.eq.s32.totalorder %v639_v23, %v1489_v63 }
 0x166   : > { %vm1183_vm12 = vmpackc.low %vm753_vm10, %vm752_vm11 }
 0x167   : > { %1184 = vmatpush.bf16.msk.msra.mxu3 %vm1183_vm12, %v1338_v3 }
 0x16b   : > { %v696_v18 = vpop.permute.xlu1 %695 }
 0x16c   : > { %vm750_vm14 = vcmp.eq.s32.totalorder %v696_v18, %v1489_v63  ;;  %v651_v19 = vpop.permute.xlu0 %650 }
 0x16d   : > { %vm1185_vm0 = vmpackc.low %vm751_vm13, %vm750_vm14  ;;  %vm735_vm1 = vcmp.eq.s32.totalorder %v651_v19, %v1489_v63 }
 0x16e   : > { %vm1169_vm2 = vmpackc.low %vm735_vm1, %vm734_vm15  ;;  %1186 = vmatpush.bf16.msk.msra.mxu3 %vm1185_vm0, %v1338_v3 }
 0x16f   : > { %1170 = vmatpush.bf16.msk.msra.mxu2 %vm1169_vm2, %v1338_v3 }
 0x173   : > { %v645_v21 = vpop.permute.xlu1 %644 }
 0x174   : > { %vm733_vm3 = vcmp.eq.s32.totalorder %v645_v21, %v1489_v63  ;;  %v642_v22 = vpop.permute.xlu0 %641 }
 0x175   : > { %vm732_vm4 = vcmp.eq.s32.totalorder %v642_v22, %v1489_v63 }
 0x176   : > { %vm1171_vm5 = vmpackc.low %vm733_vm3, %vm732_vm4 }
 0x177   : > { %1172 = vmatpush.bf16.msk.msra.mxu2 %vm1171_vm5, %v1338_v3 }
 0x17b   : > { %v636_v24 = vpop.permute.xlu1 %635 }
 0x17c   : > { %v693_v25 = vpop.permute.xlu0 %692  ;;  %vm730_vm7 = vcmp.eq.s32.totalorder %v636_v24, %v1489_v63 }
 0x17d   : > { %vm749_vm9 = vcmp.eq.s32.totalorder %v693_v25, %v1489_v63  ;;  %vm1173_vm10 = vmpackc.low %vm731_vm6, %vm730_vm7 }
 0x17e   : > { %vm1187_vm11 = vmpackc.low %vm749_vm9, %vm748_vm8  ;;  %1174 = vmatpush.bf16.msk.msra.mxu2 %vm1173_vm10, %v1338_v3 }
 0x17f   : > { %1188 = vmatpush.bf16.msk.msra.mxu3 %vm1187_vm11, %v1338_v3 }
 0x180   : > { %v581_v26 = vpop.f32.mrf.mxu0  ;;  %v595_v27 = vpop.f32.mrf.mxu1 }
 0x183   : > { %v687_v28 = vpop.permute.xlu1 %686 }
 0x184   : > { %v684_v29 = vpop.permute.xlu0 %683  ;;  %vm747_vm12 = vcmp.eq.s32.totalorder %v687_v28, %v1489_v63 }
 0x185   : > { %vm746_vm13 = vcmp.eq.s32.totalorder %v684_v29, %v1489_v63 }
 0x186   : > { %vm1189_vm14 = vmpackc.low %vm747_vm12, %vm746_vm13 }
 0x187   : > { %1190 = vmatpush.bf16.msk.msra.mxu3 %vm1189_vm14, %v1338_v3 }
 0x188   : > { %v583_v30 = vpop.f32.mrf.mxu0  ;;  %v597_v31 = vpop.f32.mrf.mxu1 }
 0x189   : > { %v844_v32 = vpack.c.bf16 %v583_v30, %v581_v26  ;;  %v845_v33 = vpack.c.bf16 %v597_v31, %v595_v27 }
 0x18b   : > { %854 = vmatmul.bf16.vlgmr.msra.gmra.mxu2 %v844_v32  ;;  %868 = vmatmul.bf16.vlgmr.msra.gmra.mxu3 %v845_v33 }
 0x20e   : > { %v855_v34 = vpop.f32.mrf.mxu2  ;;  %v869_v36 = vpop.f32.mrf.mxu3 }
 0x20f   : > { %v870_v37 = vadd.f32 %v869_v36, %v855_v34 }
 0x211   : > { %v874_v38 = vadd.f32 %v870_v37, %v842_v35 }
 0x213   : > { %876 = vst [vmem:[#allocation3] sm:$0xff] %v874_v38 }
 0x216   : > { %v857_v39 = vpop.f32.mrf.mxu2  ;;  %v871_v41 = vpop.f32.mrf.mxu3 }
 0x217   : > { %v872_v42 = vadd.f32 %v871_v41, %v857_v39  ;;  %881 = sbr.rel (%p1191_p6) target bundleno = 886 (0x376), region = 52 }
 0x219   : > { %v875_v43 = vadd.f32 %v872_v42, %v843_v40 }
 0x21b   : > { %877 = vst [vmem:[#allocation3 + $0x8] sm:$0xff] %v875_v43 }
 0x21c   : > { %v883_v44 = vld [vmem:[#allocation3] sm:$0xff]  ;;  %v1266_v45 = vld [vmem:[%s1571_s3] ss:$0 sm:$0xff]  ;;  %v1339_v47 = vmov 0   ;;  %v1340_v11 = vmov 0.0  }
 0x21d   : > { %1264 = vset.pattern.permute.xlu1 %v1339_v47  ;;  %1265 = vset.pattern.permute.xlu0 %v1339_v47  ;;  %v916_v48 = vld [vmem:[%s1573_s5] sm:$0xff]  ;;  %v889_v49 = vmul.f32 %v1266_v45, %v883_v44  ;;  %v917_v53 = vld [vmem:[%s1573_s5 + $0x8] sm:$0xff] }
 0x21e   : > { %919 = vperm.xlu1 %1264, %v916_v48   ;;  %v1267_v54 = vld [vmem:[%s1572_s4] ss:$0 sm:$0xff] }
 0x21f   : > { %v891_v51 = vmul.f32 1.442695, %v889_v49 }
 0x221   : > { %1268 = vpow2.f32 %v891_v51 }
 0x222   : > { %v884_v46 = vld [vmem:[#allocation3 + $0x8] sm:$0xff] }
 0x223   : > { %v890_v50 = vmul.f32 %v1266_v45, %v884_v46 }
 0x225   : > { %v893_v52 = vmul.f32 1.442695, %v890_v50 }
 0x226   : > { %922 = vperm.xlu1 %1264, %v917_v53  }
 0x227   : > { %1270 = vpow2.f32 %v893_v52  ;;  %v1269_v55 = vpop.eup %1268 }
 0x228   : > { %v898_v56 = vmul.f32 %v1269_v55, %v1267_v54 }
 0x22a   : > { %900 = vadd.xlane.f32.xlu0 %v898_v56 }
 0x22d   : > { %v1271_v57 = vpop.eup %1270 }
 0x22e   : > { %v899_v58 = vmul.f32 %v1271_v57, %v1267_v54 }
 0x232   : > { %902 = vadd.xlane.f32.xlu0 %v899_v58 }
 0x290   : > { %v920_v2 = vpop.permute.xlu1 %919 }
 0x291   : > { %vm924_vm15 = vcmp.eq.s32.totalorder %v920_v2, %v1489_v63 }
 0x292   : > { %v1192_v12 = vsel %vm924_vm15, 1.0, %v1340_v11 }
 0x298   : > { %v923_v8 = vpop.permute.xlu1 %922 }
 0x299   : > { %vm925_vm0 = vcmp.eq.s32.totalorder %v923_v8, %v1489_v63 }
 0x29a   : > { %v1193_v14 = vsel %vm925_vm0, 1.0, %v1340_v11 }
 0x29d   : > { %v901_v59 = vpop.xlane.xlu0 %900 }
 0x29e   : > { %v904_v60 = vadd.f32 1e-06, %v901_v59 }
 0x2a0   : > { %1272 = vrcp.f32 %v904_v60 }
 0x2a5   : > { %v903_v61 = vpop.xlane.xlu0 %902 }
 0x2a6   : > { %v1273_v62 = vpop.eup %1272  ;;  %v905_v0 = vadd.f32 1e-06, %v903_v61 }
 0x2a7   : > { %v908_v1 = vmul.f32 %v1273_v62, %v898_v56 }
 0x2a8   : > { %1274 = vrcp.f32 %v905_v0 }
 0x2a9   : > { %v910_v3 = vadd.f32 1e-06, %v908_v1 }
 0x2ab   : > { %1276 = vlog2.f32 %v910_v3 }
 0x2ae   : > { %v1275_v4 = vpop.eup %1274 }
 0x2af   : > { %v909_v5 = vmul.f32 %v1275_v4, %v899_v58 }
 0x2b1   : > { %v911_v6 = vadd.f32 1e-06, %v909_v5  ;;  %v1277_v7 = vpop.eup %1276 }
 0x2b2   : > { %v913_v9 = vmul.f32 0.6931472, %v1277_v7 }
 0x2b3   : > { %1278 = vlog2.f32 %v911_v6 }
 0x2b4   : > { %v930_v16 = vmul.f32 %v1192_v12, %v913_v9 }
 0x2b9   : > { %v1279_v10 = vpop.eup %1278 }
 0x2ba   : > { %v915_v13 = vmul.f32 0.6931472, %v1279_v10 }
 0x2bc   : > { %v931_v15 = vmul.f32 %v1193_v14, %v915_v13 }
 0x2be   : > { %v932_v17 = vadd.f32 %v931_v15, %v930_v16 }
 0x2c0   : > { %933 = vadd.xlane.f32.xlu2 %v932_v17 }
 0x333   : > { %v934_v18 = vpop.xlane.xlu2 %933 }
 0x334   : > { %v935_v19 = vrot.slane %v934_v18, 4 }
 0x336   : > { %v936_v20 = vadd.f32 %v935_v19, %v934_v18 }
 0x338   : > { %v937_v21 = vrot.slane %v936_v20, 2 }
 0x33a   : > { %v938_v22 = vadd.f32 %v937_v21, %v936_v20 }
 0x33c   : > { %v939_v23 = vrot.slane %v938_v22, 1 }
 0x33e   : > { %v940_v24 = vadd.f32 %v939_v23, %v938_v22 }
 0x340   : > { %1215 = vpush %v940_v24 }
 0x371   : > { %s1216_s27 = spop %1215 }
 0x372   : > { %s942_s28 = ssub.f32 0.0, %s1216_s27 }
 0x374   : > { %v943_v63 = vstv %s942_s28 }
 0x375   : > { %944 = vst [vmem:[#allocation4] sm:$0x1] %v943_v63 }
 0x376 PF: > { %p1221_p7 = scmp.eq.s32.totalorder %s1046_s24, 1  ;;  %s954_s7 = sshll.u32 %s1574_s6, 4  ;;  %s955_s7 = int_to_ptr.hbm [resolvable:$true] %s954_s7 }
 0x377   : > { %s1341_s8 = smov [#allocation4]  }
 0x378   : > { %s952_s9 = sshll.u32 %s1341_s8, 4  ;;  %s953_s9 = int_to_ptr.vmem [resolvable:$true] %s952_s9 }
 0x379   : > { %1218 = dma.vmem_to_hbm [thread:$0]  (%p1221_p7), %s953_s9, 16, %s955_s7, [#allocation5]  }
 0x37a   : > { %1321 = dma.done.wait (%p1221_p7), [#allocation5], 16  }
 0x37b   : > { %1323 = vsyncadd (%p1221_p7), [#allocation5], 4294967280 }
 0x37c PF: > { %s17_s23 = sadd.s32 1, %s1334_s23   ;;  %s1575_s21 = smov %s1330_s22 }
 0x37d   : > { %p14_p8 = scmp.ge.s32.totalorder %s17_s23, 4   ;;  %s1576_s22 = smov %s1578_s25 }
 0x37f   :  { %16 = sbr.rel (!%p14_p8) target bundleno = 2 (0x2), region = 89 }
 0x384   :  { %968 = vsyncpa [#allocation5], 1 }
 0x385   :  { %970 = vsyncpa [#allocation5 + $0x1], 1 }

</bundles_post_ra>
